<compile_context>
chip_gen: v6e
topology: v6e:2x2x1
jax: 0.10.0
libtpu: 0.0.40
codegen_flags: <defaults>
</compile_context>

<pallas_src>
import jax
import jax.numpy as jnp
from jax.experimental import pallas as pl
from jax.experimental.pallas import tpu as pltpu  # noqa: F401  (TPU backend)


def _copy_kernel(x_ref, o_ref):
    # Same-shape lane-dense copy; whole (tiny, ~138 KB) tensor is one block.
    o_ref[...] = x_ref[...]


def view_reshape(x, n, h, w):
    """Equivalent of torch `x.view(n, -1, h, w)` for a contiguous tensor x."""
    total = 1
    for d in x.shape:
        total *= d
    c = total // (n * h * w)
    out_shape = (n, c, h, w)

    # NOTE: the fastest implementation is simply `jnp.reshape(x, out_shape)`
    # (zero data movement). The kernel below is the minimal-cost way to keep
    # a Pallas kernel in the path: a single lane-dense full-block copy.

    # Lane-dense 2-D slab: big last dim -> dense 128-lane vregs, unmasked vst.
    if total % 8 == 0:
        flat_shape = (8, total // 8)
    else:
        flat_shape = (1, total)
    x2d = jnp.reshape(x, flat_shape)  # free (metadata-only) in XLA

    out2d = pl.pallas_call(
        _copy_kernel,
        out_shape=jax.ShapeDtypeStruct(flat_shape, x.dtype),
        # Full-array blocks (block dims equal the array dims, satisfying the
        # (8,128) rule via the full-extent exception).
        in_specs=[pl.BlockSpec(flat_shape, lambda: (0, 0))],
        out_specs=pl.BlockSpec(flat_shape, lambda: (0, 0)),
        # In/out shapes are identical now, so the copy can be in-place.
        input_output_aliases={0: 0},
    )(x2d)

    return jnp.reshape(out2d, out_shape)  # free (metadata-only) in XLA


if __name__ == "__main__":
    key = jax.random.PRNGKey(0)
    # Shapes implied by the module: x317 = randn([1, 352, 2, 7, 7]),
    # reshape args (x310, x312, x313) = (1, 7, 7).
    x317 = jax.random.normal(key, (1, 352, 2, 7, 7), dtype=jnp.float32)

    out = view_reshape(x317, 1, 7, 7)
    out = jax.block_until_ready(out)

    # Reference: JAX row-major reshape == torch .view on a contiguous tensor.
    ref = jnp.reshape(x317, (1, -1, 7, 7))
    assert out.shape == (1, 704, 7, 7), out.shape
    assert out.dtype == x317.dtype
    assert jnp.array_equal(out, ref)

    print("KERNEL_OK")
</pallas_src>

<mosaic_0001>
module attributes {stable_mosaic.version = 11 : i64} {
  func.func @_copy_kernel(%arg0: memref<8x4312xf32, #tpu.memory_space<vmem>>, %arg1: memref<8x4312xf32, #tpu.memory_space<vmem>>) attributes {dimension_semantics = [], scalar_prefetch = 0 : i64, scratch_operands = 0 : i64, tpu.core_type = #tpu.core_type<tc>} {
    %c0 = arith.constant 0 : index
    %c0_0 = arith.constant 0 : index
    %0 = vector.load %arg0[%c0, %c0_0] : memref<8x4312xf32, #tpu.memory_space<vmem>>, vector<8x4312xf32>
    %c0_1 = arith.constant 0 : index
    %c0_2 = arith.constant 0 : index
    %1 = vector.load %arg1[%c0_1, %c0_2] : memref<8x4312xf32, #tpu.memory_space<vmem>>, vector<8x4312xf32>
    tpu.vector_store %arg1[%c0_1, %c0_2], %0 {strides = array<i32>} : memref<8x4312xf32, #tpu.memory_space<vmem>>, vector<8x4312xf32>,
    return
  }
}

</mosaic_0001>

<bundles_post_ra>
// kernel: tpu_custom_call.1
= control target key start
LH: loop header
LB: loop body
LE: loop exit
PB: predicated region body
PF: predicated region fallthrough
CT: control target
= control target key end

     0   :  { %6 = vsyncpa [#allocation3], 0  ;;  %s169_s0 = inlined_call_operand.hbm [shape: f32[8,4312], index: 0, kind: input, shape index: {}, may-alias: {0,1}]   ;;  %s170_s1 = inlined_call_operand.hbm [shape: f32[8,4312], index: 1, kind: output, shape index: {}, may-alias: {0,1}]  }
   0x1   :  { %7 = vsyncpa [#allocation4], 0  ;;  %s151_s6 = smov [#allocation2]  }
   0x2   :  { %s14_s7 = sshll.u32 %s151_s6, 4  ;;  %s15_s7 = int_to_ptr.vmem [resolvable:$true] %s14_s7 }
   0x3   :  { %s115_s8 = scalar_lea.vmem %s15_s7, 4352  ;;  %p120_p1 = scmp.lt.s32.totalorder %s15_s7, %s15_s7 }
   0x4   :  { %p116_p0 = scmp.ne.s32.totalorder %s15_s7, %s115_s8  ;;  %p121_p2 = scmp.lt.s32.totalorder %s115_s8, %s115_s8 }
   0x6   :  { %p122_p3 = por %p121_p2, %p120_p1 }
   0x8   :  { %p123_p4 = pnand %p122_p3, %p116_p0 }
   0xa   :  { %126 = shalt.err (!%p123_p4)
}
   0xb   :  { %17 = dma.hbm_to_vmem [thread:$0]  %s169_s0, 4352, %s15_s7, [#allocation3]  }
   0xc   :  { %147 = dma.done.wait [#allocation3], 4352  }
   0xd   :  { %148 = vsyncadd [#allocation3], 4294962944  ;;  %v21_v0 = vld [vmem:[#allocation2] sm:$0xff]  ;;  %v22_v1 = vld [vmem:[#allocation2 + $0x8] sm:$0xff]  ;;  %s152_s0 = smov [#allocation5]   ;;  %vm88_vm0 = vcmask 719872  }
   0xe   :  { %v23_v2 = vld [vmem:[#allocation2 + $0x10] sm:$0xff]  ;;  %55 = vst [vmem:[#allocation5] sm:$0xff] %v21_v0  ;;  %56 = vst [vmem:[#allocation5 + $0x8] sm:$0xff] %v22_v1  ;;  %v24_v3 = vld [vmem:[#allocation2 + $0x18] sm:$0xff]  ;;  %s96_s11 = sshll.u32 %s152_s0, 4  ;;  %s97_s11 = int_to_ptr.vmem [resolvable:$true] %s96_s11 }
   0xf   :  { %57 = vst [vmem:[#allocation5 + $0x10] sm:$0xff] %v23_v2  ;;  %v25_v4 = vld [vmem:[#allocation2 + $0x20] sm:$0xff]  ;;  %v26_v5 = vld [vmem:[#allocation2 + $0x28] sm:$0xff]  ;;  %58 = vst [vmem:[#allocation5 + $0x18] sm:$0xff] %v24_v3  ;;  %s127_s12 = scalar_lea.vmem %s97_s11, 4352  ;;  %p132_p6 = scmp.lt.s32.totalorder %s97_s11, %s97_s11 }
  0x10   :  { %59 = vst [vmem:[#allocation5 + $0x20] sm:$0xff] %v25_v4  ;;  %60 = vst [vmem:[#allocation5 + $0x28] sm:$0xff] %v26_v5  ;;  %v27_v6 = vld [vmem:[#allocation2 + $0x30] sm:$0xff]  ;;  %v28_v7 = vld [vmem:[#allocation2 + $0x38] sm:$0xff]  ;;  %p128_p5 = scmp.ne.s32.totalorder %s97_s11, %s127_s12  ;;  %p133_p7 = scmp.lt.s32.totalorder %s127_s12, %s127_s12 }
  0x11   :  { %v29_v8 = vld [vmem:[#allocation2 + $0x40] sm:$0xff]  ;;  %61 = vst [vmem:[#allocation5 + $0x30] sm:$0xff] %v27_v6  ;;  %62 = vst [vmem:[#allocation5 + $0x38] sm:$0xff] %v28_v7  ;;  %v30_v9 = vld [vmem:[#allocation2 + $0x48] sm:$0xff] }
  0x12   :  { %63 = vst [vmem:[#allocation5 + $0x40] sm:$0xff] %v29_v8  ;;  %v31_v10 = vld [vmem:[#allocation2 + $0x50] sm:$0xff]  ;;  %v32_v11 = vld [vmem:[#allocation2 + $0x58] sm:$0xff]  ;;  %64 = vst [vmem:[#allocation5 + $0x48] sm:$0xff] %v30_v9  ;;  %p134_p8 = por %p133_p7, %p132_p6 }
  0x13   :  { %65 = vst [vmem:[#allocation5 + $0x50] sm:$0xff] %v31_v10  ;;  %66 = vst [vmem:[#allocation5 + $0x58] sm:$0xff] %v32_v11  ;;  %v33_v12 = vld [vmem:[#allocation2 + $0x60] sm:$0xff]  ;;  %v34_v13 = vld [vmem:[#allocation2 + $0x68] sm:$0xff] }
  0x14   :  { %v35_v14 = vld [vmem:[#allocation2 + $0x70] sm:$0xff]  ;;  %67 = vst [vmem:[#allocation5 + $0x60] sm:$0xff] %v33_v12  ;;  %68 = vst [vmem:[#allocation5 + $0x68] sm:$0xff] %v34_v13  ;;  %v36_v15 = vld [vmem:[#allocation2 + $0x78] sm:$0xff]  ;;  %p135_p9 = pnand %p134_p8, %p128_p5 }
  0x15   :  { %69 = vst [vmem:[#allocation5 + $0x70] sm:$0xff] %v35_v14  ;;  %v37_v16 = vld [vmem:[#allocation2 + $0x80] sm:$0xff]  ;;  %v38_v17 = vld [vmem:[#allocation2 + $0x88] sm:$0xff]  ;;  %70 = vst [vmem:[#allocation5 + $0x78] sm:$0xff] %v36_v15 }
  0x16   :  { %71 = vst [vmem:[#allocation5 + $0x80] sm:$0xff] %v37_v16  ;;  %72 = vst [vmem:[#allocation5 + $0x88] sm:$0xff] %v38_v17  ;;  %v39_v18 = vld [vmem:[#allocation2 + $0x90] sm:$0xff]  ;;  %v40_v19 = vld [vmem:[#allocation2 + $0x98] sm:$0xff] }
  0x17   :  { %v41_v20 = vld [vmem:[#allocation2 + $0xa0] sm:$0xff]  ;;  %73 = vst [vmem:[#allocation5 + $0x90] sm:$0xff] %v39_v18  ;;  %74 = vst [vmem:[#allocation5 + $0x98] sm:$0xff] %v40_v19  ;;  %v42_v21 = vld [vmem:[#allocation2 + $0xa8] sm:$0xff] }
  0x18   :  { %75 = vst [vmem:[#allocation5 + $0xa0] sm:$0xff] %v41_v20  ;;  %v43_v22 = vld [vmem:[#allocation2 + $0xb0] sm:$0xff]  ;;  %v44_v23 = vld [vmem:[#allocation2 + $0xb8] sm:$0xff]  ;;  %76 = vst [vmem:[#allocation5 + $0xa8] sm:$0xff] %v42_v21 }
  0x19   :  { %77 = vst [vmem:[#allocation5 + $0xb0] sm:$0xff] %v43_v22  ;;  %78 = vst [vmem:[#allocation5 + $0xb8] sm:$0xff] %v44_v23  ;;  %v45_v24 = vld [vmem:[#allocation2 + $0xc0] sm:$0xff]  ;;  %v46_v25 = vld [vmem:[#allocation2 + $0xc8] sm:$0xff] }
  0x1a   :  { %v47_v26 = vld [vmem:[#allocation2 + $0xd0] sm:$0xff]  ;;  %79 = vst [vmem:[#allocation5 + $0xc0] sm:$0xff] %v45_v24  ;;  %80 = vst [vmem:[#allocation5 + $0xc8] sm:$0xff] %v46_v25  ;;  %v48_v27 = vld [vmem:[#allocation2 + $0xd8] sm:$0xff] }
  0x1b   :  { %81 = vst [vmem:[#allocation5 + $0xd0] sm:$0xff] %v47_v26  ;;  %v49_v28 = vld [vmem:[#allocation2 + $0xe0] sm:$0xff]  ;;  %v50_v29 = vld [vmem:[#allocation2 + $0xe8] sm:$0xff]  ;;  %82 = vst [vmem:[#allocation5 + $0xd8] sm:$0xff] %v48_v27 }
  0x1c   :  { %83 = vst [vmem:[#allocation5 + $0xe0] sm:$0xff] %v49_v28  ;;  %84 = vst [vmem:[#allocation5 + $0xe8] sm:$0xff] %v50_v29  ;;  %v51_v30 = vld [vmem:[#allocation2 + $0xf0] sm:$0xff]  ;;  %v52_v31 = vld [vmem:[#allocation2 + $0xf8] sm:$0xff] }
  0x1d   :  { %v53_v32 = vld [vmem:[#allocation2 + $0x100] sm:$0xff]  ;;  %85 = vst [vmem:[#allocation5 + $0xf0] sm:$0xff] %v51_v30  ;;  %86 = vst [vmem:[#allocation5 + $0xf8] sm:$0xff] %v52_v31  ;;  %v54_v33 = vld [vmem:[#allocation2 + $0x108] sm:$0xff] }
  0x1e   :  { %87 = vst [vmem:[#allocation5 + $0x100] sm:$0xff] %v53_v32  ;;  %89 = vst.msk [vmem:[#allocation5 + $0x108] sm:$0xff] %vm88_vm0, %v54_v33 }
  0x1f   :  { %138 = shalt.err (!%p135_p9)
}
  0x20   :  { %99 = dma.vmem_to_hbm [thread:$0]  %s97_s11, 4352, %s170_s1, [#allocation4]  }
  0x21   :  { %149 = dma.done.wait [#allocation4], 4352  }
  0x22   :  { %150 = vsyncadd [#allocation4], 4294962944 }
  0x23   :  { %103 = vsyncpa [#allocation3], 1 }
  0x24   :  { %104 = vsyncpa [#allocation4], 1 }

</bundles_post_ra>
